<compile_context>
chip_gen: v5e
topology: v5e:2x2
jax: 0.10.0
libtpu: 0.0.40
codegen_flags: <defaults>
</compile_context>

<pallas_src>
import functools

import jax
import jax.numpy as jnp
from jax.experimental import pallas as pl
from jax.experimental.pallas import tpu as pltpu

_LANES = 128
_SUBLANES = 8


def _round_up(x, m):
    return ((x + m - 1) // m) * m


def _vmem_capacity_bytes():
    """VMEM capacity of the current chip, with a conservative (v7x) fallback."""
    try:
        return int(pltpu.get_tpu_info().vmem_capacity_bytes)
    except Exception:
        return 64 * 1024 * 1024


def _make_mlp_kernel(num_layers, compute_dtype):
    """Kernel for a `num_layers`-deep MLP: ReLU on hidden layers, identity on last."""

    def kernel(*refs):
        x_ref = refs[0]
        mu_ref = refs[1 + 2 * num_layers]
        h = x_ref[...]
        out = None
        for layer in range(num_layers):
            w_ref = refs[1 + 2 * layer]
            b_ref = refs[2 + 2 * layer]
            # MXU matmul with f32 accumulation; bias add / ReLU on the VPU.
            acc = jnp.dot(h, w_ref[...], preferred_element_type=jnp.float32)
            acc = acc + b_ref[...]
            if layer < num_layers - 1:
                h = jnp.maximum(acc, 0.0).astype(compute_dtype)  # hidden ReLU
            else:
                out = acc  # identity final activation
        mu_ref[...] = out.astype(mu_ref.dtype)

    return kernel


def prob_mlp_constant_log_std_forward(x, params, log_std, *, tile_m=None,
                                      use_bf16="auto", weight_buffer_count=None):
    """Returns (mu, log_std_tensor), matching ProbMLPConstantLogStd.forward."""
    x = jnp.asarray(x, jnp.float32)
    batch, input_dim = x.shape
    num_layers = len(params)

    dims = [input_dim] + [jnp.shape(w)[1] for w, _ in params]
    out_dim = dims[-1]

    # bf16 MXU operands (f32 accumulation) pay off for real-sized layers on
    # v5e/v6e/v7x; keep f32 at toy widths where the kernel is overhead-bound.
    if use_bf16 == "auto":
        use_bf16 = max(dims) >= _LANES
    compute_dtype = jnp.bfloat16 if use_bf16 else jnp.float32
    el_bytes = 2 if use_bf16 else 4
    row_align = 16 if use_bf16 else _SUBLANES  # sublane packing of streamed tiles

    # Zero-pad EVERY layer width (input, hiddens, output) to a lane multiple:
    # lane-dense DMA + full MXU tiles; numerically inert through matmul+ReLU.
    dims_pad = [_round_up(d, _LANES) for d in dims]
    in_pad, out_pad = dims_pad[0], dims_pad[-1]

    ws, bs = [], []
    for layer, (w, b) in enumerate(params):
        w = jnp.asarray(w, jnp.float32)
        b = jnp.asarray(b, jnp.float32).reshape(1, -1)
        k_extra = dims_pad[layer] - w.shape[0]
        n_extra = dims_pad[layer + 1] - w.shape[1]
        if k_extra or n_extra:
            w = jnp.pad(w, ((0, k_extra), (0, n_extra)))
            b = jnp.pad(b, ((0, 0), (0, n_extra)))
        ws.append(w.astype(compute_dtype))  # cast once here: kernel's dot sees bf16
        bs.append(b)                        # biases stay f32 (added to f32 acc)

    weight_bytes = sum(w.size * el_bytes + b_.size * 4 for w, b_ in zip(ws, bs))
    buf_count = 2 if weight_buffer_count is None else int(weight_buffer_count)
    weights_resident = buf_count * weight_bytes

    # Chip-aware VMEM budget (review: don't hardcode v7x numbers on 128 MiB chips).
    capacity = _vmem_capacity_bytes()
    budget = int(capacity * 0.45)
    vmem_cap = int(capacity * 0.75)
    tile_cap = 4096 if capacity >= (96 << 20) else 1024

    # Per-row VMEM: double-buffered x / mu stream tiles PLUS the live f32 hidden
    # activations between matmuls (review fix: previously ignored).
    act_row = 4 * max(dims_pad[l] + dims_pad[l + 1] for l in range(num_layers))
    per_row = 2 * el_bytes * in_pad + 2 * 4 * out_pad + act_row

    batch_align = _round_up(batch, row_align)
    if tile_m is None:
        avail = budget - weights_resident
        if avail < per_row * row_align:
            # TODO(synk): weights too large to stay VMEM-resident -- tile the widest
            # layer's N (pltpu.emit_pipeline over weight column tiles) instead of
            # shrinking tile_m; not needed at these layer sizes.
            avail = per_row * row_align
        tile_m = min(tile_cap, avail // per_row)
    tile_m = max(row_align, (int(tile_m) // row_align) * row_align)
    tile_m = min(tile_m, batch_align)
    # >= 2 grid steps whenever the batch allows it, so both v7x TensorCores get a
    # tile under dimension_semantics=("parallel",); harmless on 1-TC v5e/v6e.
    if batch_align >= 2 * row_align:
        tile_m = min(tile_m, _round_up(pl.cdiv(batch_align, 2), row_align))
    # Prefer a tile that divides the batch exactly (no pad rows, no wrapper slice).
    if batch % row_align == 0 and batch % tile_m != 0:
        for cand in range(tile_m, max(tile_m // 2, row_align) - 1, -row_align):
            if batch % cand == 0:
                tile_m = cand
                break

    batch_pad = _round_up(batch, tile_m)
    col_extra = in_pad - input_dim
    if batch_pad != batch or col_extra:
        x = jnp.pad(x, ((0, batch_pad - batch), (0, col_extra)))
    x = x.astype(compute_dtype)
    grid = (batch_pad // tile_m,)

    def _const_spec(shape):
        # Weights/biases: constant index_map -> VMEM-resident across all steps.
        if weight_buffer_count is None:
            return pl.BlockSpec(shape, lambda i: (0, 0))
        # TODO(synk): default weight_buffer_count=1 on v7x once pl.Buffered
        # pipeline_mode is verified on the deployment jax version (halves resident
        # weight VMEM; the 2nd pipeline buffer is dead weight for constant maps).
        return pl.BlockSpec(shape, lambda i: (0, 0),
                            pipeline_mode=pl.Buffered(buf_count))

    in_specs = [pl.BlockSpec((tile_m, in_pad), lambda i: (i, 0))]
    for w, b in zip(ws, bs):
        in_specs.append(_const_spec(w.shape))
        in_specs.append(_const_spec(b.shape))
    out_spec = pl.BlockSpec((tile_m, out_pad), lambda i: (i, 0))

    # Advisory cost hint so XLA schedules the custom call sensibly.
    flops = sum(2 * batch_pad * dims_pad[l] * dims_pad[l + 1]
                for l in range(num_layers))
    bytes_accessed = (batch_pad * in_pad * el_bytes
                      + batch_pad * out_pad * 4 + weight_bytes)
    cost = pl.CostEstimate(flops=int(flops), transcendentals=0,
                           bytes_accessed=int(bytes_accessed))

    vmem_need = weights_resident + tile_m * per_row
    vmem_limit = int(min(max(2 * vmem_need, 4 << 20), vmem_cap))

    mu_full = pl.pallas_call(
        _make_mlp_kernel(num_layers, compute_dtype),
        out_shape=jax.ShapeDtypeStruct((batch_pad, out_pad), jnp.float32),
        grid=grid,
        in_specs=in_specs,
        out_specs=out_spec,
        compiler_params=pltpu.CompilerParams(
            dimension_semantics=("parallel",),  # shard batch tiles across TCs (v7x)
            vmem_limit_bytes=vmem_limit,
        ),
        cost_estimate=cost,
    )(x, *[a for wb in zip(ws, bs) for a in wb])

    # Skip the extra XLA slice copy entirely when no padding was actually added.
    if batch_pad != batch or out_pad != out_dim:
        mu = mu_full[:batch, :out_dim]
    else:
        mu = mu_full
    # Constant broadcast lives in the wrapper: no HBM write stream wasted in the
    # kernel, and it works even if log_std is a traced / learned scalar.
    log_std_t = jnp.full(mu.shape, log_std, dtype=mu.dtype)
    return mu, log_std_t


def init_params(key, input_dim, hidden_dims, output_dim):
    """Deterministic parameter init (same shapes nn.Linear would create)."""
    dims = [input_dim, *hidden_dims, output_dim]
    params = []
    for d_in, d_out in zip(dims[:-1], dims[1:]):
        key, wk, bk = jax.random.split(key, 3)
        bound = 1.0 / jnp.sqrt(d_in)  # matches PyTorch Linear default init range
        w = jax.random.uniform(wk, (d_in, d_out), jnp.float32, -bound, bound)
        b = jax.random.uniform(bk, (1, d_out), jnp.float32, -bound, bound)
        params.append((w, b))
    return params


def reference_forward(x, params, log_std):
    """Pure-JAX reference for correctness checking."""
    h = x
    for w, b in params[:-1]:
        h = jnp.maximum(h @ w + b, 0.0)
    w, b = params[-1]
    mu = h @ w + b
    return mu, jnp.ones_like(mu) * log_std


if __name__ == "__main__":
    batch = 50          # deliberately NOT a multiple of the tile -> exercises padding
    input_dim = 16
    hidden_dims = [32, 32]
    output_dim = 8
    log_std = -0.5

    key = jax.random.PRNGKey(0)
    key, xk = jax.random.split(key)
    x = jax.random.normal(xk, (batch, input_dim), jnp.float32)
    params = init_params(key, input_dim, hidden_dims, output_dim)

    mu_ref, logstd_ref = reference_forward(x, params, log_std)

    # 1) Explicit small tile -> multi-step pipelined grid with row padding.
    fwd = jax.jit(functools.partial(prob_mlp_constant_log_std_forward, tile_m=16))
    mu, logstd = fwd(x, params, log_std)   # log_std traced -> no per-value recompiles
    jax.block_until_ready((mu, logstd))
    assert mu.shape == (batch, output_dim)
    assert logstd.shape == (batch, output_dim)
    assert jnp.allclose(mu, mu_ref, atol=1e-4, rtol=1e-4), float(jnp.max(jnp.abs(mu - mu_ref)))
    assert jnp.allclose(logstd, logstd_ref, atol=1e-6)

    # 2) Auto tile sizing (chip-aware VMEM budget, >=2 grid steps for megacore).
    fwd_auto = jax.jit(prob_mlp_constant_log_std_forward)
    mu_a, logstd_a = fwd_auto(x, params, log_std)
    jax.block_until_ready((mu_a, logstd_a))
    assert jnp.allclose(mu_a, mu_ref, atol=1e-4, rtol=1e-4)
    assert jnp.allclose(logstd_a, logstd_ref, atol=1e-6)

    # 3) bf16 MXU-operand path (what real >=128-wide layers would auto-select).
    fwd_bf16 = jax.jit(functools.partial(prob_mlp_constant_log_std_forward,
                                         use_bf16=True))
    mu_b, _ = fwd_bf16(x, params, log_std)
    jax.block_until_ready(mu_b)
    assert jnp.allclose(mu_b, mu_ref, atol=1e-1, rtol=1e-1)

    print("KERNEL_OK")
</pallas_src>

<mosaic_0001>
module attributes {stable_mosaic.version = 11 : i64} {
  func.func @kernel(%arg0: i32, %arg1: memref<16x128xf32, #tpu.memory_space<vmem>>, %arg2: memref<128x128xf32, #tpu.memory_space<vmem>>, %arg3: memref<1x128xf32, #tpu.memory_space<vmem>>, %arg4: memref<128x128xf32, #tpu.memory_space<vmem>>, %arg5: memref<1x128xf32, #tpu.memory_space<vmem>>, %arg6: memref<128x128xf32, #tpu.memory_space<vmem>>, %arg7: memref<1x128xf32, #tpu.memory_space<vmem>>, %arg8: memref<16x128xf32, #tpu.memory_space<vmem>>) attributes {dimension_semantics = [#tpu.dimension_semantics<parallel>], iteration_bounds = array<i64: 4>, scalar_prefetch = 0 : i64, scratch_operands = 0 : i64, tpu.core_type = #tpu.core_type<tc>, window_params = [{transform_indices = @transform_0, window_bounds = array<i64: 16, 128>}, {pipeline_mode = #tpu.pipeline_mode<synchronous>, transform_indices = @transform_1, window_bounds = array<i64: 128, 128>}, {pipeline_mode = #tpu.pipeline_mode<synchronous>, transform_indices = @transform_2, window_bounds = array<i64: 1, 128>}, {pipeline_mode = #tpu.pipeline_mode<synchronous>, transform_indices = @transform_3, window_bounds = array<i64: 128, 128>}, {pipeline_mode = #tpu.pipeline_mode<synchronous>, transform_indices = @transform_4, window_bounds = array<i64: 1, 128>}, {pipeline_mode = #tpu.pipeline_mode<synchronous>, transform_indices = @transform_5, window_bounds = array<i64: 128, 128>}, {pipeline_mode = #tpu.pipeline_mode<synchronous>, transform_indices = @transform_6, window_bounds = array<i64: 1, 128>}, {transform_indices = @transform_7, window_bounds = array<i64: 16, 128>}]} {
    %c0 = arith.constant 0 : index
    %c0_0 = arith.constant 0 : index
    %0 = vector.load %arg1[%c0, %c0_0] : memref<16x128xf32, #tpu.memory_space<vmem>>, vector<16x128xf32>
    %c0_1 = arith.constant 0 : index
    %c0_2 = arith.constant 0 : index
    %1 = vector.load %arg2[%c0_1, %c0_2] : memref<128x128xf32, #tpu.memory_space<vmem>>, vector<128x128xf32>
    %cst = arith.constant dense<0.000000e+00> : vector<16x128xf32>
    %2 = tpu.matmul %0, %1, %cst {dimension_numbers = #tpu.dot_dimension_numbers<[1], [0], [0], [1], [0, 0, 1, 1], [], []>} : vector<16x128xf32>, vector<128x128xf32>, vector<16x128xf32> -> vector<16x128xf32>
    %c0_3 = arith.constant 0 : index
    %c0_4 = arith.constant 0 : index
    %3 = vector.load %arg3[%c0_3, %c0_4] : memref<1x128xf32, #tpu.memory_space<vmem>>, vector<1x128xf32>
    %4 = vector.broadcast %3 : vector<1x128xf32> to vector<16x128xf32>
    %5 = arith.addf %2, %4 : vector<16x128xf32>
    %cst_5 = arith.constant 0.000000e+00 : f32
    %6 = vector.broadcast %cst_5 : f32 to vector<16x128xf32>
    %7 = arith.maximumf %5, %6 : vector<16x128xf32>
    %c0_6 = arith.constant 0 : index
    %c0_7 = arith.constant 0 : index
    %8 = vector.load %arg4[%c0_6, %c0_7] : memref<128x128xf32, #tpu.memory_space<vmem>>, vector<128x128xf32>
    %cst_8 = arith.constant dense<0.000000e+00> : vector<16x128xf32>
    %9 = tpu.matmul %7, %8, %cst_8 {dimension_numbers = #tpu.dot_dimension_numbers<[1], [0], [0], [1], [0, 0, 1, 1], [], []>} : vector<16x128xf32>, vector<128x128xf32>, vector<16x128xf32> -> vector<16x128xf32>
    %c0_9 = arith.constant 0 : index
    %c0_10 = arith.constant 0 : index
    %10 = vector.load %arg5[%c0_9, %c0_10] : memref<1x128xf32, #tpu.memory_space<vmem>>, vector<1x128xf32>
    %11 = vector.broadcast %10 : vector<1x128xf32> to vector<16x128xf32>
    %12 = arith.addf %9, %11 : vector<16x128xf32>
    %cst_11 = arith.constant 0.000000e+00 : f32
    %13 = vector.broadcast %cst_11 : f32 to vector<16x128xf32>
    %14 = arith.maximumf %12, %13 : vector<16x128xf32>
    %c0_12 = arith.constant 0 : index
    %c0_13 = arith.constant 0 : index
    %15 = vector.load %arg6[%c0_12, %c0_13] : memref<128x128xf32, #tpu.memory_space<vmem>>, vector<128x128xf32>
    %cst_14 = arith.constant dense<0.000000e+00> : vector<16x128xf32>
    %16 = tpu.matmul %14, %15, %cst_14 {dimension_numbers = #tpu.dot_dimension_numbers<[1], [0], [0], [1], [0, 0, 1, 1], [], []>} : vector<16x128xf32>, vector<128x128xf32>, vector<16x128xf32> -> vector<16x128xf32>
    %c0_15 = arith.constant 0 : index
    %c0_16 = arith.constant 0 : index
    %17 = vector.load %arg7[%c0_15, %c0_16] : memref<1x128xf32, #tpu.memory_space<vmem>>, vector<1x128xf32>
    %18 = vector.broadcast %17 : vector<1x128xf32> to vector<16x128xf32>
    %19 = arith.addf %16, %18 : vector<16x128xf32>
    %c0_17 = arith.constant 0 : index
    %c0_18 = arith.constant 0 : index
    %20 = vector.load %arg8[%c0_17, %c0_18] : memref<16x128xf32, #tpu.memory_space<vmem>>, vector<16x128xf32>
    tpu.vector_store %arg8[%c0_17, %c0_18], %19 {strides = array<i32>} : memref<16x128xf32, #tpu.memory_space<vmem>>, vector<16x128xf32>,
    return
  }
  func.func @transform_0(%arg0: i32) -> (i32, i32) {
    %c0_i32 = arith.constant 0 : i32
    %c0_i32_0 = arith.constant 0 : i32
    return %arg0, %c0_i32 : i32, i32
  }
  func.func @transform_1(%arg0: i32) -> (i32, i32) {
    %c0_i32 = arith.constant 0 : i32
    %c0_i32_0 = arith.constant 0 : i32
    %c0_i32_1 = arith.constant 0 : i32
    return %c0_i32, %c0_i32_0 : i32, i32
  }
  func.func @transform_2(%arg0: i32) -> (i32, i32) {
    %c0_i32 = arith.constant 0 : i32
    %c0_i32_0 = arith.constant 0 : i32
    %c0_i32_1 = arith.constant 0 : i32
    return %c0_i32, %c0_i32_0 : i32, i32
  }
  func.func @transform_3(%arg0: i32) -> (i32, i32) {
    %c0_i32 = arith.constant 0 : i32
    %c0_i32_0 = arith.constant 0 : i32
    %c0_i32_1 = arith.constant 0 : i32
    return %c0_i32, %c0_i32_0 : i32, i32
  }
  func.func @transform_4(%arg0: i32) -> (i32, i32) {
    %c0_i32 = arith.constant 0 : i32
    %c0_i32_0 = arith.constant 0 : i32
    %c0_i32_1 = arith.constant 0 : i32
    return %c0_i32, %c0_i32_0 : i32, i32
  }
  func.func @transform_5(%arg0: i32) -> (i32, i32) {
    %c0_i32 = arith.constant 0 : i32
    %c0_i32_0 = arith.constant 0 : i32
    %c0_i32_1 = arith.constant 0 : i32
    return %c0_i32, %c0_i32_0 : i32, i32
  }
  func.func @transform_6(%arg0: i32) -> (i32, i32) {
    %c0_i32 = arith.constant 0 : i32
    %c0_i32_0 = arith.constant 0 : i32
    %c0_i32_1 = arith.constant 0 : i32
    return %c0_i32, %c0_i32_0 : i32, i32
  }
  func.func @transform_7(%arg0: i32) -> (i32, i32) {
    %c0_i32 = arith.constant 0 : i32
    %c0_i32_0 = arith.constant 0 : i32
    return %arg0, %c0_i32 : i32, i32
  }
}

</mosaic_0001>

<bundles_post_ra>
// kernel: prob_mlp_constant_log_std_forward.1
= control target key start
LH: loop header
LB: loop body
LE: loop exit
PB: predicated region body
PF: predicated region fallthrough
CT: control target
= control target key end

     0   :  { %s561_s24 = smov 0   ;;  %s740_s0 = inlined_call_operand.vmem [shape: f32[64,128], index: 0, kind: input, shape index: {}]   ;;  %s741_s1 = inlined_call_operand.vmem [shape: f32[128,128], index: 1, kind: input, shape index: {}]   ;;  %s742_s2 = inlined_call_operand.vmem [shape: f32[1,128], index: 2, kind: input, shape index: {}]   ;;  %s743_s3 = inlined_call_operand.vmem [shape: f32[128,128], index: 3, kind: input, shape index: {}]   ;;  %s744_s4 = inlined_call_operand.vmem [shape: f32[1,128], index: 4, kind: input, shape index: {}]   ;;  %s745_s5 = inlined_call_operand.vmem [shape: f32[128,128], index: 5, kind: input, shape index: {}]   ;;  %s746_s6 = inlined_call_operand.vmem [shape: f32[1,128], index: 6, kind: input, shape index: {}]   ;;  %s747_s7 = inlined_call_operand.vmem [shape: f32[64,128], index: 7, kind: output, shape index: {}]  }
   0x1 LB: > { %s475_s25 = sadd.s32 4294967295, %s519_s24   ;;  %p479_p0 = scmp.ge.s32.totalorder %s519_s24, 1  ;;  %s519_s24 = sphi %s561_s24, %s17_s24  }
   0x2   : > { %p238_p1 = scmp.lt.s32.totalorder %s519_s24, 5 }
   0x4   : > { %p239_p2 = pnand %p479_p0, %p238_p1 }
   0x5   : > { %s480_s8 = sshll.u32 (!%p239_p2), %s475_s25, 1 }
   0x6   : > { %242 = sbr.rel (%p239_p2) target bundleno = 446 (0x1be), region = 48  ;;  %p271_p3 = scmp.lt.s32.totalorder (!%p239_p2), %s480_s8, 7 }
   0xb   : > { %v299_v0 = vld [vmem:[%s741_s1 + $0x78] sm:$0xff]  ;;  %v298_v1 = vld [vmem:[%s741_s1 + $0x70] sm:$0xff]  ;;  %v297_v2 = vld [vmem:[%s741_s1 + $0x68] sm:$0xff]  ;;  %s749_s8 = smov (!%p271_p3, %s480_s8), 7 }
   0xc   : > { %304 = vmatpush.msra.mxu0 %v299_v0  ;;  %486 = vmatpush.msra.mxu3 %v299_v0  ;;  %v296_v3 = vld [vmem:[%s741_s1 + $0x60] sm:$0xff]  ;;  %v344_v4 = vld [vmem:[%s743_s3 + $0x78] sm:$0xff]  ;;  %v343_v5 = vld [vmem:[%s743_s3 + $0x70] sm:$0xff]  ;;  %s481_s30 = sshll.u32 %s749_s8, 3 }
   0xd   : > { %v295_v6 = vld [vmem:[%s741_s1 + $0x58] sm:$0xff]  ;;  %349 = vmatpush.msra.mxu1 %v344_v4  ;;  %v342_v7 = vld [vmem:[%s743_s3 + $0x68] sm:$0xff]  ;;  %v294_v8 = vld [vmem:[%s741_s1 + $0x50] sm:$0xff]  ;;  %s274_s18 = scalar_lea.vmem %s740_s0, %s481_s30  ;;  %s280_s10 = scalar_lea.vmem %s747_s7, %s481_s30 }
   0xe   : > { %305 = vmatpush.msra.mxu0 %v298_v1  ;;  %487 = vmatpush.msra.mxu3 %v298_v1  ;;  %v341_v9 = vld [vmem:[%s743_s3 + $0x60] sm:$0xff]  ;;  %v293_v10 = vld [vmem:[%s741_s1 + $0x48] sm:$0xff]  ;;  %v340_v11 = vld [vmem:[%s743_s3 + $0x58] sm:$0xff] }
   0xf   : > { %350 = vmatpush.msra.mxu1 %v343_v5  ;;  %v292_v12 = vld [vmem:[%s741_s1 + $0x40] sm:$0xff]  ;;  %v339_v13 = vld [vmem:[%s743_s3 + $0x50] sm:$0xff]  ;;  %v291_v14 = vld [vmem:[%s741_s1 + $0x38] sm:$0xff] }
  0x10   : > { %306 = vmatpush.msra.mxu0 %v297_v2  ;;  %488 = vmatpush.msra.mxu3 %v297_v2  ;;  %v338_v15 = vld [vmem:[%s743_s3 + $0x48] sm:$0xff]  ;;  %v290_v16 = vld [vmem:[%s741_s1 + $0x30] sm:$0xff]  ;;  %v337_v17 = vld [vmem:[%s743_s3 + $0x40] sm:$0xff] }
  0x11   : > { %351 = vmatpush.msra.mxu1 %v342_v7  ;;  %v289_v18 = vld [vmem:[%s741_s1 + $0x28] sm:$0xff]  ;;  %v336_v19 = vld [vmem:[%s743_s3 + $0x38] sm:$0xff]  ;;  %v288_v20 = vld [vmem:[%s741_s1 + $0x20] sm:$0xff] }
  0x12   : > { %307 = vmatpush.msra.mxu0 %v296_v3  ;;  %489 = vmatpush.msra.mxu3 %v296_v3  ;;  %v335_v21 = vld [vmem:[%s743_s3 + $0x30] sm:$0xff]  ;;  %v287_v22 = vld [vmem:[%s741_s1 + $0x18] sm:$0xff]  ;;  %v334_v23 = vld [vmem:[%s743_s3 + $0x28] sm:$0xff] }
  0x13   : > { %352 = vmatpush.msra.mxu1 %v341_v9  ;;  %v286_v24 = vld [vmem:[%s741_s1 + $0x10] sm:$0xff]  ;;  %v333_v25 = vld [vmem:[%s743_s3 + $0x20] sm:$0xff]  ;;  %v285_v26 = vld [vmem:[%s741_s1 + $0x8] sm:$0xff] }
  0x14   : > { %308 = vmatpush.msra.mxu0 %v295_v6  ;;  %490 = vmatpush.msra.mxu3 %v295_v6  ;;  %v332_v27 = vld [vmem:[%s743_s3 + $0x18] sm:$0xff]  ;;  %v284_v28 = vld [vmem:[%s741_s1] sm:$0xff]  ;;  %v283_v30 = vld [vmem:[%s274_s18 + $0x8] sm:$0xff] }
  0x15   : > { %353 = vmatpush.msra.mxu1 %v340_v11  ;;  %v282_v29 = vld [vmem:[%s274_s18] sm:$0xff]  ;;  %v331_v31 = vld [vmem:[%s743_s3 + $0x10] sm:$0xff]  ;;  %v330_v32 = vld [vmem:[%s743_s3 + $0x8] sm:$0xff] }
  0x16   : > { %309 = vmatpush.msra.mxu0 %v294_v8  ;;  %491 = vmatpush.msra.mxu3 %v294_v8  ;;  %v329_v33 = vld [vmem:[%s743_s3] sm:$0xff]  ;;  %v389_v34 = vld [vmem:[%s745_s5 + $0x78] sm:$0xff]  ;;  %v388_v35 = vld [vmem:[%s745_s5 + $0x70] sm:$0xff] }
  0x17   : > { %354 = vmatpush.msra.mxu1 %v339_v13  ;;  %394 = vmatpush.msra.mxu2 %v389_v34  ;;  %v387_v36 = vld [vmem:[%s745_s5 + $0x68] sm:$0xff]  ;;  %v386_v37 = vld [vmem:[%s745_s5 + $0x60] sm:$0xff]  ;;  %v385_v38 = vld [vmem:[%s745_s5 + $0x58] sm:$0xff] }
  0x18   : > { %310 = vmatpush.msra.mxu0 %v293_v10  ;;  %492 = vmatpush.msra.mxu3 %v293_v10  ;;  %v384_v39 = vld [vmem:[%s745_s5 + $0x50] sm:$0xff]  ;;  %v383_v40 = vld [vmem:[%s745_s5 + $0x48] sm:$0xff]  ;;  %v382_v41 = vld [vmem:[%s745_s5 + $0x40] sm:$0xff] }
  0x19   : > { %355 = vmatpush.msra.mxu1 %v338_v15  ;;  %395 = vmatpush.msra.mxu2 %v388_v35  ;;  %v381_v42 = vld [vmem:[%s745_s5 + $0x38] sm:$0xff]  ;;  %v510_v43 = vld [vmem:[%s742_s2] ss:$0 sm:$0xff]  ;;  %v380_v44 = vld [vmem:[%s745_s5 + $0x30] sm:$0xff] }
  0x1a   : > { %311 = vmatpush.msra.mxu0 %v292_v12  ;;  %493 = vmatpush.msra.mxu3 %v292_v12  ;;  %v379_v45 = vld [vmem:[%s745_s5 + $0x28] sm:$0xff]  ;;  %v378_v48 = vld [vmem:[%s745_s5 + $0x20] sm:$0xff]  ;;  %v377_v50 = vld [vmem:[%s745_s5 + $0x18] sm:$0xff] }
  0x1b   : > { %356 = vmatpush.msra.mxu1 %v337_v17  ;;  %396 = vmatpush.msra.mxu2 %v387_v36  ;;  %v376_v54 = vld [vmem:[%s745_s5 + $0x10] sm:$0xff]  ;;  %v375_v55 = vld [vmem:[%s745_s5 + $0x8] sm:$0xff]  ;;  %v374_v56 = vld [vmem:[%s745_s5] sm:$0xff] }
  0x1c   : > { %312 = vmatpush.msra.mxu0 %v291_v14  ;;  %494 = vmatpush.msra.mxu3 %v291_v14  ;;  %v511_v57 = vld [vmem:[%s744_s4] ss:$0 sm:$0xff] }
  0x1d   : > { %357 = vmatpush.msra.mxu1 %v336_v19  ;;  %397 = vmatpush.msra.mxu2 %v386_v37  ;;  %v512_v0 = vld [vmem:[%s746_s6] ss:$0 sm:$0xff] }
  0x1e   : > { %313 = vmatpush.msra.mxu0 %v290_v16  ;;  %495 = vmatpush.msra.mxu3 %v290_v16 }
  0x1f   : > { %358 = vmatpush.msra.mxu1 %v335_v21  ;;  %398 = vmatpush.msra.mxu2 %v385_v38 }
  0x20   : > { %314 = vmatpush.msra.mxu0 %v289_v18  ;;  %496 = vmatpush.msra.mxu3 %v289_v18 }
  0x21   : > { %359 = vmatpush.msra.mxu1 %v334_v23  ;;  %399 = vmatpush.msra.mxu2 %v384_v39 }
  0x22   : > { %315 = vmatpush.msra.mxu0 %v288_v20  ;;  %497 = vmatpush.msra.mxu3 %v288_v20 }
  0x23   : > { %360 = vmatpush.msra.mxu1 %v333_v25  ;;  %400 = vmatpush.msra.mxu2 %v383_v40 }
  0x24   : > { %316 = vmatpush.msra.mxu0 %v287_v22  ;;  %498 = vmatpush.msra.mxu3 %v287_v22 }
  0x25   : > { %361 = vmatpush.msra.mxu1 %v332_v27  ;;  %401 = vmatpush.msra.mxu2 %v382_v41 }
  0x26   : > { %317 = vmatpush.msra.mxu0 %v286_v24  ;;  %499 = vmatpush.msra.mxu3 %v286_v24 }
  0x27   : > { %362 = vmatpush.msra.mxu1 %v331_v31  ;;  %402 = vmatpush.msra.mxu2 %v381_v42 }
  0x28   : > { %318 = vmatpush.msra.mxu0 %v285_v26  ;;  %500 = vmatpush.msra.mxu3 %v285_v26 }
  0x29   : > { %363 = vmatpush.msra.mxu1 %v330_v32  ;;  %403 = vmatpush.msra.mxu2 %v380_v44 }
  0x2a   : > { %319 = vmatpush.msra.mxu0 %v284_v28  ;;  %501 = vmatpush.msra.mxu3 %v284_v28 }
  0x2b   : > { %320 = vmatmul.f32.vlgmr.msra.gmra.mxu0 %v282_v29  ;;  %323 = vmatmul.f32.vlgmr.msra.gmra.mxu3 %v283_v30 }
  0x2c   : > { %364 = vmatpush.msra.mxu1 %v329_v33  ;;  %404 = vmatpush.msra.mxu2 %v379_v45 }
  0x2e   : > { %405 = vmatpush.msra.mxu2 %v378_v48 }
  0x30   : > { %406 = vmatpush.msra.mxu2 %v377_v50 }
  0x32   : > { %407 = vmatpush.msra.mxu2 %v376_v54 }
  0x34   : > { %408 = vmatpush.msra.mxu2 %v375_v55 }
  0x36   : > { %409 = vmatpush.msra.mxu2 %v374_v56 }
  0xa8   : > { %v321_v46 = vpop.f32.mrf.mxu0 }
  0xa9   : > { %v322_v47 = vadd.f32 %v510_v43, %v321_v46 }
  0xab   : > { %v327_v49 = vmax.f32 %v322_v47, 0.0 }
  0xad   : > { %365 = vmatmul.f32.vlgmr.msra.gmra.mxu1 %v327_v49 }
  0xae   : > { %v324_v51 = vpop.f32.mrf.mxu3 }
  0xaf   : > { %v325_v52 = vadd.f32 %v510_v43, %v324_v51 }
  0xb1   : > { %v328_v53 = vmax.f32 %v325_v52, 0.0 }
  0xb5   : > { %368 = vmatmul.f32.gmra.mxu1 %v328_v53 }
 0x12a   : > { %v366_v58 = vpop.f32.mrf.mxu1 }
 0x12b   : > { %v367_v59 = vadd.f32 %v511_v57, %v366_v58 }
 0x12d   : > { %v372_v60 = vmax.f32 %v367_v59, 0.0 }
 0x12f   : > { %410 = vmatmul.f32.vlgmr.msra.gmra.mxu2 %v372_v60 }
 0x132   : > { %v369_v61 = vpop.f32.mrf.mxu1 }
 0x133   : > { %v370_v62 = vadd.f32 %v511_v57, %v369_v61 }
 0x135   : > { %v373_v63 = vmax.f32 %v370_v62, 0.0 }
 0x137   : > { %413 = vmatmul.f32.gmra.mxu2 %v373_v63 }
 0x1b2   : > { %v411_v1 = vpop.f32.mrf.mxu2 }
 0x1b3   : > { %v412_v2 = vadd.f32 %v512_v0, %v411_v1 }
 0x1b5   : > { %417 = vst [vmem:[%s280_s10] sm:$0xff] %v412_v2 }
 0x1ba   : > { %v414_v3 = vpop.f32.mrf.mxu2 }
 0x1bb   : > { %v415_v4 = vadd.f32 %v512_v0, %v414_v3 }
 0x1bd   : > { %418 = vst [vmem:[%s280_s10 + $0x8] sm:$0xff] %v415_v4 }
 0x1be PF: > { %s17_s24 = sadd.s32 1, %s519_s24  }
 0x1bf   : > { %p14_p4 = scmp.ge.s32.totalorder %s17_s24, 6  }
 0x1c1   :  { %16 = sbr.rel (!%p14_p4) target bundleno = 1 (0x1), region = 78 }

</bundles_post_ra>
